<compile_context>
chip_gen: v7x
topology: tpu7x:2x2x1
jax: 0.10.0
libtpu: 0.0.40
codegen_flags: <defaults>
</compile_context>

<pallas_src>
import functools

import jax
import jax.numpy as jnp
from jax.experimental import pallas as pl
from jax.experimental.pallas import tpu as pltpu


# VMEM accounting: double-buffered input + output x-blocks ~= 4 * block_bytes.
_VMEM_BLOCK_BUDGET = 12 * 1024 * 1024   # bytes allowed for those x blocks
_VMEM_LIMIT = 32 * 1024 * 1024          # explicit scoped-VMEM limit (safe on v7x)


def _round_up(a, m):
    return (a + m - 1) // m * m


# --------------------------------------------------------------------------
# Single-pass kernel: one (Bb, C, Lp) block -> pool, MLP, gate, scale.
# --------------------------------------------------------------------------
def _single_pass_kernel(x_ref, w1t_ref, w2t_ref, o_ref, *, L_valid, inv_L):
    xf = x_ref[...].astype(jnp.float32)              # (Bb, C, Lp)
    Lp = xf.shape[-1]

    if Lp != L_valid:                                # ragged tail -> mask
        lane = jax.lax.broadcasted_iota(jnp.int32, xf.shape, 2)
        valid = lane < L_valid
        s = jnp.sum(jnp.where(valid, xf, 0.0), axis=-1)          # (Bb, C)
        mx = jnp.max(jnp.where(valid, xf, -jnp.inf), axis=-1)    # (Bb, C)
    else:
        s = jnp.sum(xf, axis=-1)
        mx = jnp.max(xf, axis=-1)
    avg = s * inv_L

    w1t = w1t_ref[...]                               # (C, Cr) pre-transposed
    w2t = w2t_ref[...]                               # (Cr, C) pre-transposed
    # fc(avg) + fc(max) = (relu(avg@W1) + relu(max@W1)) @ W2  (W2 is linear)
    h = (jnp.maximum(jnp.dot(avg, w1t, preferred_element_type=jnp.float32), 0.0)
         + jnp.maximum(jnp.dot(mx, w1t, preferred_element_type=jnp.float32), 0.0))
    fc = jnp.dot(h, w2t, preferred_element_type=jnp.float32)     # (Bb, C)

    gate = jax.nn.sigmoid(fc)[:, :, None]            # (Bb, C, 1)
    o_ref[...] = (gate * xf).astype(o_ref.dtype)


# --------------------------------------------------------------------------
# Two-pass path (large C*L): pass 1 streams L-tiles and emits the gate.
# --------------------------------------------------------------------------
def _gate_kernel(x_ref, w1t_ref, w2t_ref, g_ref, sum_acc, max_acc,
                 *, L_valid, Lt, inv_L, needs_mask):
    l = pl.program_id(1)

    @pl.when(l == 0)
    def _():
        sum_acc[...] = jnp.zeros_like(sum_acc)
        max_acc[...] = jnp.full_like(max_acc, -jnp.inf)

    xf = x_ref[...].astype(jnp.float32)              # (Bb, C, Lt)
    if needs_mask:
        lane = jax.lax.broadcasted_iota(jnp.int32, xf.shape, 2) + l * Lt
        valid = lane < L_valid
        s = jnp.sum(jnp.where(valid, xf, 0.0), axis=-1)
        m = jnp.max(jnp.where(valid, xf, -jnp.inf), axis=-1)
    else:
        s = jnp.sum(xf, axis=-1)
        m = jnp.max(xf, axis=-1)
    sum_acc[...] += s
    max_acc[...] = jnp.maximum(max_acc[...], m)

    @pl.when(l == pl.num_programs(1) - 1)
    def _():
        avg = sum_acc[...] * inv_L
        mx = max_acc[...]
        w1t = w1t_ref[...]
        w2t = w2t_ref[...]
        h = (jnp.maximum(jnp.dot(avg, w1t, preferred_element_type=jnp.float32), 0.0)
             + jnp.maximum(jnp.dot(mx, w1t, preferred_element_type=jnp.float32), 0.0))
        fc = jnp.dot(h, w2t, preferred_element_type=jnp.float32)
        g_ref[...] = jax.nn.sigmoid(fc)[:, :, None].astype(g_ref.dtype)


def _scale_kernel(x_ref, g_ref, o_ref):
    xf = x_ref[...].astype(jnp.float32)              # (Bb, C, Lt)
    g = g_ref[...].astype(jnp.float32)               # (Bb, C, 1)
    o_ref[...] = (g * xf).astype(o_ref.dtype)


# --------------------------------------------------------------------------
# Wrapper
# --------------------------------------------------------------------------
def channel_attention(x, w1, w2, *, force_two_pass=False, _max_lt=None):
    """x: (B, C, L); w1: (Cr, C); w2: (C, Cr). Returns (B, C, L), dtype of x."""
    B, C, L = x.shape
    Cr = w1.shape[0]
    itemsize = jnp.dtype(x.dtype).itemsize

    # Host-side (free) weight transposes: kernel contracts over lane-major axis.
    w1t = jnp.asarray(w1).T                          # (C, Cr)
    w2t = jnp.asarray(w2).T                          # (Cr, C)

    Lp = _round_up(L, 128)                           # lane-dense output
    per_b_bytes = 4 * C * Lp * itemsize              # dbl-buffered in + out, per batch elem

    use_single_pass = (per_b_bytes <= _VMEM_BLOCK_BUDGET) and not force_two_pass

    if use_single_pass:
        # Pack batch elements per grid step to amortize per-step overhead,
        # but keep >= 2 parallel grid steps when B >= 2 (v7x has 2 TensorCores).
        max_bb = max(1, _VMEM_BLOCK_BUDGET // per_b_bytes)
        if B >= 2:
            max_bb = min(max_bb, max(1, B // 2))
        Bb = max(d for d in range(1, B + 1) if B % d == 0 and d <= max_bb)
        # TODO(synk): if B == 1 on v7x, an extra L-split parallel axis would keep
        # both TensorCores busy; not needed for these shapes.

        x_p = x if Lp == L else jnp.pad(x, ((0, 0), (0, 0), (0, Lp - L)))

        out_p = pl.pallas_call(
            functools.partial(_single_pass_kernel, L_valid=L, inv_L=1.0 / L),
            out_shape=jax.ShapeDtypeStruct((B, C, Lp), x.dtype),
            grid_spec=pltpu.PrefetchScalarGridSpec(
                num_scalar_prefetch=0,
                grid=(B // Bb,),
                in_specs=[
                    pl.BlockSpec((Bb, C, Lp), lambda b: (b, 0, 0)),
                    pl.BlockSpec((C, Cr), lambda b: (0, 0)),
                    pl.BlockSpec((Cr, C), lambda b: (0, 0)),
                ],
                out_specs=pl.BlockSpec((Bb, C, Lp), lambda b: (b, 0, 0)),
            ),
            compiler_params=pltpu.CompilerParams(
                dimension_semantics=("parallel",),
                vmem_limit_bytes=_VMEM_LIMIT),
        )(x_p, w1t, w2t)
        return out_p if Lp == L else out_p[:, :, :L]

    # ---------------- Two-pass path: stream L in lane-dense tiles -----------
    Bb = 1
    lt_budget = max(1, _VMEM_BLOCK_BUDGET // (4 * Bb * C * itemsize))
    Lt = max(128, (lt_budget // 128) * 128)
    if _max_lt is not None:
        Lt = min(Lt, _max_lt)
    Lt = min(Lt, _round_up(L, 128))
    # TODO(synk): if even a 128-wide L tile overflows the budget (huge C), the
    # channel dim would also need tiling; not needed for these shapes.
    Lp = _round_up(L, Lt)

    x_p = x if Lp == L else jnp.pad(x, ((0, 0), (0, 0), (0, Lp - L)))
    n_b = B // Bb
    n_l = Lp // Lt

    gate = pl.pallas_call(
        functools.partial(_gate_kernel, L_valid=L, Lt=Lt, inv_L=1.0 / L,
                          needs_mask=(Lp != L)),
        out_shape=jax.ShapeDtypeStruct((B, C, 1), jnp.float32),
        grid_spec=pltpu.PrefetchScalarGridSpec(
            num_scalar_prefetch=0,
            grid=(n_b, n_l),                         # reduction (L) axis last
            in_specs=[
                pl.BlockSpec((Bb, C, Lt), lambda b, l: (b, 0, l)),
                pl.BlockSpec((C, Cr), lambda b, l: (0, 0)),
                pl.BlockSpec((Cr, C), lambda b, l: (0, 0)),
            ],
            out_specs=pl.BlockSpec((Bb, C, 1), lambda b, l: (b, 0, 0)),
            scratch_shapes=[pltpu.VMEM((Bb, C), jnp.float32),
                            pltpu.VMEM((Bb, C), jnp.float32)],
        ),
        compiler_params=pltpu.CompilerParams(
            dimension_semantics=("parallel", "arbitrary"),
            vmem_limit_bytes=_VMEM_LIMIT),
    )(x_p, w1t, w2t)

    out_p = pl.pallas_call(
        _scale_kernel,
        out_shape=jax.ShapeDtypeStruct((B, C, Lp), x.dtype),
        grid_spec=pltpu.PrefetchScalarGridSpec(
            num_scalar_prefetch=0,
            grid=(n_b, n_l),
            in_specs=[
                pl.BlockSpec((Bb, C, Lt), lambda b, l: (b, 0, l)),
                pl.BlockSpec((Bb, C, 1), lambda b, l: (b, 0, 0)),
            ],
            out_specs=pl.BlockSpec((Bb, C, Lt), lambda b, l: (b, 0, l)),
        ),
        compiler_params=pltpu.CompilerParams(
            dimension_semantics=("parallel", "parallel"),
            vmem_limit_bytes=_VMEM_LIMIT),
    )(x_p, gate)
    return out_p if Lp == L else out_p[:, :, :L]


# --------------------------------------------------------------------------
# Pure-JAX reference mirroring the PyTorch forward.
# --------------------------------------------------------------------------
def channel_attention_ref(x, w1, w2):
    avg = jnp.mean(x, axis=-1, keepdims=True)                # (B, C, 1)
    mx = jnp.max(x, axis=-1, keepdims=True)                  # (B, C, 1)

    def fc(p):
        h = jnp.einsum('oc,bcl->bol', w1, p)
        h = jnp.maximum(h, 0.0)
        return jnp.einsum('oc,bcl->bol', w2, h)

    gate = jax.nn.sigmoid(fc(avg) + fc(mx))                  # (B, C, 1)
    return gate * x


if __name__ == "__main__":
    k0, k1, k2 = jax.random.split(jax.random.PRNGKey(0), 3)

    def make_inputs(key, B, C, L, ratio):
        Cr = max(1, C // ratio)
        kx, kw1, kw2 = jax.random.split(key, 3)
        x = jax.random.normal(kx, (B, C, L), dtype=jnp.float32)
        w1 = jax.random.normal(kw1, (Cr, C), dtype=jnp.float32) * 0.1
        w2 = jax.random.normal(kw2, (C, Cr), dtype=jnp.float32) * 0.1
        return x, w1, w2

    # 1) single-pass path, L already a multiple of 128
    x, w1, w2 = make_inputs(k0, 2, 64, 128, 16)
    out = jax.block_until_ready(channel_attention(x, w1, w2))
    ref = channel_attention_ref(x, w1, w2)
    assert out.shape == x.shape
    assert jnp.allclose(out, ref, atol=1e-5, rtol=1e-5), "single-pass mismatch"

    # 2) single-pass path, ragged L (exercises padded-tail masking)
    x, w1, w2 = make_inputs(k1, 2, 32, 200, 16)
    out = jax.block_until_ready(channel_attention(x, w1, w2))
    ref = channel_attention_ref(x, w1, w2)
    assert jnp.allclose(out, ref, atol=1e-5, rtol=1e-5), "ragged single-pass mismatch"

    # 3) two-pass (L-streamed) path, forced with small L tiles so the
    #    accumulator + tail-mask logic is exercised on multiple L blocks
    x, w1, w2 = make_inputs(k2, 3, 64, 200, 16)
    out = jax.block_until_ready(
        channel_attention(x, w1, w2, force_two_pass=True, _max_lt=128))
    ref = channel_attention_ref(x, w1, w2)
    assert jnp.allclose(out, ref, atol=1e-5, rtol=1e-5), "two-pass mismatch"

    print("KERNEL_OK")
</pallas_src>

<mosaic_0001>
module attributes {stable_mosaic.version = 11 : i64} {
  func.func @_single_pass_kernel(%arg0: i32, %arg1: memref<1x64x128xf32, #tpu.memory_space<vmem>>, %arg2: memref<64x4xf32, #tpu.memory_space<vmem>>, %arg3: memref<4x64xf32, #tpu.memory_space<vmem>>, %arg4: memref<1x64x128xf32, #tpu.memory_space<vmem>>) attributes {dimension_semantics = [#tpu.dimension_semantics<parallel>], iteration_bounds = array<i64: 2>, scalar_prefetch = 0 : i64, scratch_operands = 0 : i64, tpu.core_type = #tpu.core_type<tc>, window_params = [{transform_indices = @transform_0, window_bounds = array<i64: 1, 64, 128>}, {pipeline_mode = #tpu.pipeline_mode<synchronous>, transform_indices = @transform_1, window_bounds = array<i64: 64, 4>}, {pipeline_mode = #tpu.pipeline_mode<synchronous>, transform_indices = @transform_2, window_bounds = array<i64: 4, 64>}, {transform_indices = @transform_3, window_bounds = array<i64: 1, 64, 128>}]} {
    %c0 = arith.constant 0 : index
    %c0_0 = arith.constant 0 : index
    %c0_1 = arith.constant 0 : index
    %0 = vector.load %arg1[%c0, %c0_0, %c0_1] : memref<1x64x128xf32, #tpu.memory_space<vmem>>, vector<1x64x128xf32>
    %cst = arith.constant dense<0.000000e+00> : vector<1x64xf32>
    %1 = vector.multi_reduction <add>, %0, %cst [2] : vector<1x64x128xf32> to vector<1x64xf32>
    %cst_2 = arith.constant dense<0xFF800000> : vector<1x64xf32>
    %2 = vector.multi_reduction <maximumf>, %0, %cst_2 [2] : vector<1x64x128xf32> to vector<1x64xf32>
    %cst_3 = arith.constant 7.812500e-03 : f32
    %3 = vector.broadcast %cst_3 : f32 to vector<1x64xf32>
    %4 = arith.mulf %1, %3 : vector<1x64xf32>
    %c0_4 = arith.constant 0 : index
    %c0_5 = arith.constant 0 : index
    %5 = vector.load %arg2[%c0_4, %c0_5] : memref<64x4xf32, #tpu.memory_space<vmem>>, vector<64x4xf32>
    %c0_6 = arith.constant 0 : index
    %c0_7 = arith.constant 0 : index
    %6 = vector.load %arg3[%c0_6, %c0_7] : memref<4x64xf32, #tpu.memory_space<vmem>>, vector<4x64xf32>
    %cst_8 = arith.constant dense<0.000000e+00> : vector<1x4xf32>
    %7 = tpu.matmul %4, %5, %cst_8 {dimension_numbers = #tpu.dot_dimension_numbers<[1], [0], [0], [1], [0, 0, 1, 1], [], []>} : vector<1x64xf32>, vector<64x4xf32>, vector<1x4xf32> -> vector<1x4xf32>
    %cst_9 = arith.constant 0.000000e+00 : f32
    %8 = vector.broadcast %cst_9 : f32 to vector<1x4xf32>
    %9 = arith.maximumf %7, %8 : vector<1x4xf32>
    %cst_10 = arith.constant dense<0.000000e+00> : vector<1x4xf32>
    %10 = tpu.matmul %2, %5, %cst_10 {dimension_numbers = #tpu.dot_dimension_numbers<[1], [0], [0], [1], [0, 0, 1, 1], [], []>} : vector<1x64xf32>, vector<64x4xf32>, vector<1x4xf32> -> vector<1x4xf32>
    %cst_11 = arith.constant 0.000000e+00 : f32
    %11 = vector.broadcast %cst_11 : f32 to vector<1x4xf32>
    %12 = arith.maximumf %10, %11 : vector<1x4xf32>
    %13 = arith.addf %9, %12 : vector<1x4xf32>
    %cst_12 = arith.constant dense<0.000000e+00> : vector<1x64xf32>
    %14 = tpu.matmul %13, %6, %cst_12 {dimension_numbers = #tpu.dot_dimension_numbers<[1], [0], [0], [1], [0, 0, 1, 1], [], []>} : vector<1x4xf32>, vector<4x64xf32>, vector<1x64xf32> -> vector<1x64xf32>
    %15 = arith.negf %14 : vector<1x64xf32>
    %16 = math.exp %15 : vector<1x64xf32>
    %cst_13 = arith.constant 1.000000e+00 : f32
    %17 = vector.broadcast %cst_13 : f32 to vector<1x64xf32>
    %18 = arith.addf %17, %16 : vector<1x64xf32>
    %19 = arith.divf %17, %18 : vector<1x64xf32>
    %20 = vector.shape_cast %19 : vector<1x64xf32> to vector<1x64x1xf32>
    %21 = vector.broadcast %20 : vector<1x64x1xf32> to vector<1x64x128xf32>
    %22 = arith.mulf %21, %0 : vector<1x64x128xf32>
    %c0_14 = arith.constant 0 : index
    %c0_15 = arith.constant 0 : index
    %c0_16 = arith.constant 0 : index
    %23 = vector.load %arg4[%c0_14, %c0_15, %c0_16] : memref<1x64x128xf32, #tpu.memory_space<vmem>>, vector<1x64x128xf32>
    tpu.vector_store %arg4[%c0_14, %c0_15, %c0_16], %22 {strides = array<i32>} : memref<1x64x128xf32, #tpu.memory_space<vmem>>, vector<1x64x128xf32>,
    return
  }
  func.func @transform_0(%arg0: i32) -> (i32, i32, i32) {
    %c0_i32 = arith.constant 0 : i32
    %c0_i32_0 = arith.constant 0 : i32
    %c0_i32_1 = arith.constant 0 : i32
    return %arg0, %c0_i32, %c0_i32_0 : i32, i32, i32
  }
  func.func @transform_1(%arg0: i32) -> (i32, i32) {
    %c0_i32 = arith.constant 0 : i32
    %c0_i32_0 = arith.constant 0 : i32
    %c0_i32_1 = arith.constant 0 : i32
    return %c0_i32, %c0_i32_0 : i32, i32
  }
  func.func @transform_2(%arg0: i32) -> (i32, i32) {
    %c0_i32 = arith.constant 0 : i32
    %c0_i32_0 = arith.constant 0 : i32
    %c0_i32_1 = arith.constant 0 : i32
    return %c0_i32, %c0_i32_0 : i32, i32
  }
  func.func @transform_3(%arg0: i32) -> (i32, i32, i32) {
    %c0_i32 = arith.constant 0 : i32
    %c0_i32_0 = arith.constant 0 : i32
    %c0_i32_1 = arith.constant 0 : i32
    return %arg0, %c0_i32, %c0_i32_0 : i32, i32, i32
  }
}

</mosaic_0001>

<bundles_post_ra>
// kernel: tpu_custom_call.1
= control target key start
LH: loop header
LB: loop body
LE: loop exit
PB: predicated region body
PF: predicated region fallthrough
CT: control target
= control target key end

     0   :  { %8 = vsyncpa [#allocation3], 0  ;;  %s1283_s0 = inlined_call_operand.hbm [shape: f32[2,64,128], index: 0, kind: input, shape index: {}]   ;;  %s1284_s1 = inlined_call_operand.vmem [shape: f32[64,4], index: 1, kind: input, shape index: {}]   ;;  %s1285_s2 = inlined_call_operand.vmem [shape: f32[4,64], index: 2, kind: input, shape index: {}]   ;;  %s1286_s3 = inlined_call_operand.hbm [shape: f32[2,64,128], index: 3, kind: output, shape index: {}]  }
   0x1   :  { %10 = vsyncpa [#allocation3 + $0x1], 0 }
   0x2   :  { %11 = vsyncpa [#allocation4], 0 }
   0x3   :  { %13 = vsyncpa [#allocation4 + $0x1], 0  ;;  %s1018_s12 = smov 0   ;;  %s1020_s13 = smov 0  }
   0x4   :  { %s1022_s14 = smov 0   ;;  %s1024_s15 = smov 0  }
   0x5 LB: > { %s1039_s16 = sadd.s32 4294967295, %s987_s15   ;;  %s726_s17 = sadd.s32 4294967294, %s987_s15   ;;  %s987_s15 = sphi %s1024_s15, %s1299_s15   ;;  %s983_s14 = sphi %s1022_s14, %s1298_s14   ;;  %s979_s13 = sphi %s1020_s13, %s1297_s13   ;;  %s975_s12 = sphi %s1018_s12, %s1296_s12  }
   0x6   : > { %s1043_s18 = sadd.s32 1, %s987_s15   ;;  %s26_s19 = sadd.s32 1, %s983_s14 }
   0x7   : > { %s23_s20 = ssub.s32 %s987_s15, %s1043_s18  ;;  %p33_p0 = scmp.ne.s32.totalorder %s983_s14, %s979_s13 }
   0x8   : > { %p24_p1 = scmp.eq.s32.totalorder %s23_s20, 0  ;;  %p34_p2 = scmp.eq.s32.totalorder %s987_s15, 0 }
   0x9   : > { %p39_p3 = scmp.ne.s32.totalorder %s979_s13, %s975_s12  ;;  %p40_p4 = scmp.eq.s32.totalorder %s1039_s16, 0 }
   0xa   : > { %s1055_s21 = scalar_select %p24_p1, %s983_s14, %s26_s19  }
   0xb   : > { %p1057_p5 = por %p34_p2, %p33_p0  ;;  %p1061_p6 = por %p40_p4, %p39_p3 }
   0xc   : > { %p105_p7 = scmp.eq.s32.totalorder %s1039_s16, 1  ;;  %p111_p8 = scmp.eq.s32.totalorder %s726_s17, 1 }
   0xd   : > { %p846_p10 = scmp.lt.s32.totalorder %s987_s15, 2  ;;  %s137_s26 = sand.u32 1, %s983_s14  }
   0xe   : > { %p1068_p11 = por %p105_p7, %p33_p0  ;;  %p1072_p12 = por %p111_p8, %p39_p3 }
   0xf   : > { %s745_s27 = sshll.u32 %s987_s15, 10  ;;  %s729_s28 = sshll.u32 %s137_s26, 6 }
  0x10   : > { %s1290_s24 = scalar_select %p1068_p11, 1, 0 }
  0x11   : > { %s1291_s25 = scalar_select %p1072_p12, 1, 0 }
  0x12   : > { %s1081_s4 = scalar_lea.hbm %s1283_s0, %s745_s27  ;;  %s141_s5 = scalar_lea.vmem [#allocation2], %s729_s28 }
  0x13   : > { %s148_s6 = sshll.u32 %s141_s5, 4  ;;  %p1085_p13 = pnand %p846_p10, %p1057_p5  ;;  %s1089_s6 = int_to_ptr.vmem [resolvable:$true] %s148_s6 }
  0x14   : > { %s1091_s8 = scalar_lea.sflag [#allocation3], %s137_s26  ;;  %s891_s9 = scalar_lea.hbm %s1081_s4, 1024 }
  0x15   : > { %p892_p0 = scmp.ne.s32.totalorder %s1081_s4, %s891_s9  ;;  %p893_p1 = pneg %p1085_p13 }
  0x16   : > { %s896_s17 = scalar_lea.hbm %s1283_s0, 2048  ;;  %p897_p4 = scmp.lt.u32.totalorder %s1081_s4, %s1283_s0 }
  0x17   : > { %p894_p2 = pnand %p893_p1, %p892_p0  ;;  %p898_p5 = scmp.lt.u32.totalorder %s896_s17, %s891_s9 }
  0x18   : > { %p900_p8 = scmp.lt.u32.totalorder %s891_s9, %s1081_s4 }
  0x19   : > { %p895_p3 = pneg %p894_p2  ;;  %p899_p7 = por %p898_p5, %p897_p4 }
  0x1b   : > { %p901_p10 = por %p900_p8, %p899_p7 }
  0x1d   : > { %p902_p9 = pnand %p901_p10, %p895_p3 }
  0x1f   : > { %905 = shalt.err (!%p902_p9)
}
  0x20   : > { %s906_s22 = scalar_lea.vmem %s1089_s6, 1024  ;;  %s989_s26 = smov [#allocation2]  }
  0x21   : > { %p907_p0 = scmp.ne.s32.totalorder %s1089_s6, %s906_s22  ;;  %s911_s27 = sshll.u32 %s989_s26, 4  ;;  %s912_s27 = int_to_ptr.vmem [resolvable:$false] %s911_s27 }
  0x22   : > { %s913_s28 = scalar_lea.vmem %s912_s27, 2048  ;;  %p914_p11 = scmp.lt.s32.totalorder %s1089_s6, %s912_s27 }
  0x23   : > { %p909_p2 = pnand %p907_p0, %p893_p1  ;;  %p915_p4 = scmp.lt.s32.totalorder %s913_s28, %s906_s22 }
  0x25   : > { %p910_p12 = pneg %p909_p2  ;;  %p916_p5 = por %p915_p4, %p914_p11 }
  0x27   : > { %p917_p7 = pnand %p916_p5, %p910_p12 }
  0x29   : > { %920 = shalt.err (!%p917_p7)
}
  0x2a   : > { %s990_s29 = smov 128   ;;  %s991_s30 = smov 8  }
  0x2b   : > { %841 = dma.hbm_to_vmem [thread:$0]  (!%p1085_p13), %s1081_s4, 1024, %s1089_s6, %s1091_s8, %s990_s29, %s990_s29, %s991_s30  }
  0x2c   : > { %p732_p9 = scmp.ge.s32.totalorder %s987_s15, 1  ;;  %p156_p1 = scmp.lt.s32.totalorder %s987_s15, 3 }
  0x2e   : > { %p157_p3 = pnand %p732_p9, %p156_p1 }
  0x2f   : > { %s1122_s5 = sand.u32 (!%p157_p3), 1, %s979_s13  }
  0x30   : > { %160 = sbr.rel (%p157_p3) target bundleno = 835 (0x343), region = 32  ;;  %s733_s9 = sshll.u32 (!%p157_p3), %s1122_s5, 6 }
  0x31   : > { %s163_s10 = scalar_lea.sflag (!%p157_p3), [#allocation3], %s1122_s5  ;;  %s166_s11 = scalar_lea.vmem (!%p157_p3), [#allocation2], %s733_s9 }
  0x37   : > { %966 = dma.done.wait (%p1061_p6), %s163_s10, 1024  }
  0x38   : > { %968 = vsyncadd (%p1061_p6), %s163_s10, 4294966272  ;;  %v1132_v0 = vld [vmem:[%s166_s11 + $0x10] sm:$0xff]  ;;  %v1134_v1 = vld [vmem:[%s166_s11] sm:$0xff]  ;;  %v992_v11 = vmov 0.0|0.0   ;;  %vm993_vm0 = vmmov 0   ;;  %v994_v21 = vmov 0.0   ;;  %v254_v24 = vlaneseq }
  0x39   : > { %201 = vadd.xlane.f32.xlu1 %v1132_v0  ;;  %197 = vadd.xlane.f32.xlu0 %v1134_v1  ;;  %v1138_v2 = vld [vmem:[%s166_s11 + $0x18] sm:$0xff]  ;;  %v1140_v3 = vld [vmem:[%s166_s11 + $0x8] sm:$0xff]  ;;  %v1146_v4 = vld [vmem:[%s166_s11 + $0x20] sm:$0xff]  ;;  %vm265_vm1 = vcmask 130112   ;;  %vm272_vm2 = vcmask 195712   ;;  %vm279_vm3 = vcmask 261312  }
  0x3a   : > { %v1150_v5 = vld [vmem:[%s166_s11 + $0x28] sm:$0xff]  ;;  %v1154_v6 = vld [vmem:[%s166_s11 + $0x30] sm:$0xff]  ;;  %v1158_v7 = vld [vmem:[%s166_s11 + $0x38] sm:$0xff]  ;;  %810 = vmatprep.subr.bf16.mxu0 %v992_v11  ;;  %822 = vmatprep.subr.bf16.mxu1 %v992_v11  ;;  %v255_v27 = vand.u32 127, %v254_v24  ;;  %v1193_v31 = vshrl.u32 %v254_v24, 7  ;;  %vm286_vm4 = vcmask 326912  }
  0x3b   : > { %v237_v8 = vld [vmem:[%s1284_s1] sm:$0xff]  ;;  %v238_v9 = vld [vmem:[%s1284_s1 + $0x8] sm:$0xff]  ;;  %v239_v12 = vld [vmem:[%s1284_s1 + $0x10] sm:$0xff]  ;;  %783 = vmatprep.mubr.msk.f32.mxu0 %vm993_vm0, %v994_v21  ;;  %802 = vmatprep.mubr.msk.f32.mxu1 %vm993_vm0, %v994_v21  ;;  %vm293_vm5 = vcmask 392512   ;;  %vm300_vm6 = vcmask 458112   ;;  %vm307_vm7 = vcmask 523712  }
  0x3c   : > { %v811_v10 = vpack.c.bf16 %v238_v9, %v237_v8  ;;  %v240_v13 = vld [vmem:[%s1284_s1 + $0x18] sm:$0xff]  ;;  %v241_v15 = vld [vmem:[%s1284_s1 + $0x20] sm:$0xff]  ;;  %v242_v16 = vld [vmem:[%s1284_s1 + $0x28] sm:$0xff]  ;;  %v260_v28 = vadd.s32 4294967288, %v255_v27  ;;  %v267_v34 = vadd.s32 4294967280, %v255_v27  ;;  %v258_v37 = vsub.s32 %v255_v27, %v1193_v31  ;;  %s188_s6 = scalar_lea.vmem [#allocation5], %s733_s9 }
  0x3d   : > { %203 = vadd.xlane.f32.xlu1 %v1138_v2  ;;  %199 = vadd.xlane.f32.xlu0 %v1140_v3  ;;  %v814_v14 = vpack.c.bf16 %v240_v13, %v239_v12  ;;  %v817_v17 = vpack.c.bf16 %v242_v16, %v241_v15  ;;  %v243_v18 = vld [vmem:[%s1284_s1 + $0x30] sm:$0xff]  ;;  %v244_v19 = vld [vmem:[%s1284_s1 + $0x38] sm:$0xff]  ;;  %v274_v39 = vadd.s32 4294967272, %v255_v27  ;;  %v281_v40 = vadd.s32 4294967264, %v255_v27  ;;  %s653_s9 = sshll.u32 %s188_s6, 4  ;;  %s746_s7 = sshll.u32 %s1039_s16, 10  ;;  %s1233_s9 = int_to_ptr.vmem [resolvable:$true] %s653_s9 }
  0x3e   : > { %812 = vmatpush3.bf16.msra.mxu0 %v811_v10  ;;  %824 = vmatpush3.bf16.msra.mxu1 %v811_v10  ;;  %v820_v20 = vpack.c.bf16 %v244_v19, %v243_v18  ;;  %v263_v32 = vsub.s32 %v260_v28, %v1193_v31  ;;  %v288_v42 = vadd.s32 4294967256, %v255_v27  ;;  %v270_v43 = vsub.s32 %v267_v34, %v1193_v31  ;;  %s1238_s19 = scalar_lea.hbm %s1286_s3, %s746_s7  ;;  %s640_s20 = scalar_lea.sflag [#allocation4], %s1122_s5 }
  0x3f   : > { %813 = vmatprep.subr.bf16.mxu0 %v992_v11  ;;  %825 = vmatprep.subr.bf16.mxu1 %v992_v11  ;;  %v295_v47 = vadd.s32 4294967248, %v255_v27  ;;  %v277_v49 = vsub.s32 %v274_v39, %v1193_v31  ;;  %v284_v51 = vsub.s32 %v281_v40, %v1193_v31  ;;  %v302_v56 = vadd.s32 4294967240, %v255_v27  ;;  %v245_v40 = vld [vmem:[%s1285_s2] sm:$0xf]  ;;  %s921_s22 = scalar_lea.vmem %s1233_s9, 1024  ;;  %p1293_p11 = scmp.ne.s32.totalorder %s1290_s24, 0 }
  0x40   : > { %v291_v54 = vsub.s32 %v288_v42, %v1193_v31  ;;  %vm309_vm8 = vcmask 523264   ;;  %vm508_vm9 = vcmask 1043456   ;;  %vm504_vm10 = vcmask 31744   ;;  %p922_p6 = scmp.ne.s32.totalorder %s1233_s9, %s921_s22  ;;  %s995_s16 = smov [#allocation5]  }
  0x41   : > { %215 = vmax.xlane.f32.xlu1 %v1140_v3  ;;  %213 = vmax.xlane.f32.xlu0 %v1134_v1  ;;  %v298_v59 = vsub.s32 %v295_v47, %v1193_v31  ;;  %v305_v13 = vsub.s32 %v302_v56, %v1193_v31  ;;  %s925_s26 = sshll.u32 %s995_s16, 4  ;;  %s926_s26 = int_to_ptr.vmem [resolvable:$false] %s925_s26 }
  0x42   : > { %815 = vmatpush3.bf16.msra.mxu0 %v814_v14  ;;  %827 = vmatpush3.bf16.msra.mxu1 %v814_v14  ;;  %p923_p12 = pnand %p922_p6, %p1293_p11  ;;  %s927_s27 = scalar_lea.vmem %s926_s26, 2048 }
  0x43   : > { %816 = vmatprep.subr.bf16.mxu0 %v992_v11  ;;  %828 = vmatprep.subr.bf16.mxu1 %v992_v11  ;;  %p928_p8 = scmp.lt.s32.totalorder %s1233_s9, %s926_s26  ;;  %p929_p10 = scmp.lt.s32.totalorder %s927_s27, %s921_s22 }
  0x44   : > { %p924_p13 = pneg %p923_p12 }
  0x45   : > { %217 = vmax.xlane.f32.xlu1 %v1132_v0  ;;  %205 = vadd.xlane.f32.xlu0 %v1146_v4  ;;  %p930_p0 = por %p929_p10, %p928_p8 }
  0x46   : > { %818 = vmatpush3.bf16.msra.mxu0 %v817_v17  ;;  %830 = vmatpush3.bf16.msra.mxu1 %v817_v17 }
  0x47   : > { %819 = vmatprep.subr.bf16.mxu0 %v992_v11  ;;  %831 = vmatprep.subr.bf16.mxu1 %v992_v11  ;;  %p931_p2 = pnand %p930_p0, %p924_p13 }
  0x49   : > { %219 = vmax.xlane.f32.xlu1 %v1138_v2  ;;  %207 = vadd.xlane.f32.xlu0 %v1150_v5 }
  0x4a   : > { %821 = vmatpush3.bf16.msra.mxu0 %v820_v20  ;;  %833 = vmatpush3.bf16.msra.mxu1 %v820_v20 }
  0x4b   : > { %805 = vmatprep.subr.mxu0 %v994_v21 }
  0x4d   : > { %221 = vmax.xlane.f32.xlu1 %v1146_v4  ;;  %209 = vadd.xlane.f32.xlu0 %v1154_v6 }
  0x51   : > { %223 = vmax.xlane.f32.xlu1 %v1150_v5  ;;  %211 = vadd.xlane.f32.xlu0 %v1158_v7 }
  0x55   : > { %225 = vmax.xlane.f32.xlu0 %v1154_v6  ;;  %227 = vmax.xlane.f32.xlu1 %v1158_v7 }
  0xc6   : > { %v202_v22 = vpop.xlane.xlu1 %201  ;;  %v198_v23 = vpop.xlane.xlu0 %197 }
  0xc7   : > { %v229_v38 = vmul.f32 0.0078125, %v198_v23  ;;  %v231_v44 = vmul.f32 0.0078125, %v202_v22 }
  0xc9   : > { %v259_v48 = vrot.slane %v229_v38, %v258_v37  ;;  %v271_v57 = vrot.slane %v231_v44, %v270_v43 }
  0xca   : > { %v204_v25 = vpop.xlane.xlu1 %203  ;;  %v200_v26 = vpop.xlane.xlu0 %199 }
  0xcb   : > { %v230_v33 = vmul.f32 0.0078125, %v200_v26  ;;  %v232_v50 = vmul.f32 0.0078125, %v204_v25 }
  0xcd   : > { %v264_v41 = vrot.slane %v230_v33, %v263_v32  ;;  %v278_v61 = vrot.slane %v232_v50, %v277_v49 }
  0xce   : > { %v216_v29 = vpop.xlane.xlu1 %215  ;;  %v214_v30 = vpop.xlane.xlu0 %213 }
  0xcf   : > { %v266_v53 = vsel %vm265_vm1, %v264_v41, %v259_v48  ;;  %v398_v63 = vrot.slane %v216_v29, %v263_v32  ;;  %v394_v8 = vrot.slane %v214_v30, %v258_v37 }
  0xd0   : > { %v273_v9 = vsel %vm272_vm2, %v271_v57, %v266_v53 }
  0xd1   : > { %v280_v18 = vsel %vm279_vm3, %v278_v61, %v273_v9  ;;  %v399_v22 = vsel %vm265_vm1, %v398_v63, %v394_v8 }
  0xd2   : > { %v218_v35 = vpop.xlane.xlu1 %217  ;;  %v206_v36 = vpop.xlane.xlu0 %205 }
  0xd3   : > { %v233_v52 = vmul.f32 0.0078125, %v206_v36  ;;  %v403_v11 = vrot.slane %v218_v35, %v270_v43 }
  0xd5   : > { %v285_v10 = vrot.slane %v233_v52, %v284_v51  ;;  %v404_v25 = vsel %vm272_vm2, %v403_v11, %v399_v22  ;;  %v590_v52 = vsub.s32 0, %v1193_v31 }
  0xd6   : > { %v220_v45 = vpop.xlane.xlu1 %219  ;;  %v208_v46 = vpop.xlane.xlu0 %207 }
  0xd7   : > { %v234_v55 = vmul.f32 0.0078125, %v208_v46  ;;  %v408_v14 = vrot.slane %v220_v45, %v277_v49  ;;  %v287_v23 = vsel %vm286_vm4, %v285_v10, %v280_v18 }
  0xd9   : > { %v292_v12 = vrot.slane %v234_v55, %v291_v54  ;;  %v409_v28 = vsel %vm279_vm3, %v408_v14, %v404_v25 }
  0xda   : > { %v222_v58 = vpop.xlane.xlu1 %221  ;;  %v210_v60 = vpop.xlane.xlu0 %209 }
  0xdb   : > { %v235_v62 = vmul.f32 0.0078125, %v210_v60  ;;  %v413_v19 = vrot.slane %v222_v58, %v284_v51  ;;  %v294_v26 = vsel %vm293_vm5, %v292_v12, %v287_v23 }
  0xdd   : > { %v299_v15 = vrot.slane %v235_v62, %v298_v59  ;;  %v414_v33 = vsel %vm286_vm4, %v413_v19, %v409_v28 }
  0xde   : > { %v224_v16 = vpop.xlane.xlu1 %223  ;;  %v212_v17 = vpop.xlane.xlu0 %211 }
  0xdf   : > { %v236_v20 = vmul.f32 0.0078125, %v212_v17  ;;  %v418_v24 = vrot.slane %v224_v16, %v291_v54  ;;  %v301_v32 = vsel %vm300_vm6, %v299_v15, %v294_v26 }
  0xe1   : > { %v306_v27 = vrot.slane %v236_v20, %v305_v13  ;;  %v419_v37 = vsel %vm293_vm5, %v418_v24, %v414_v33 }
  0xe2   : > { %v226_v29 = vpop.xlane.xlu0 %225  ;;  %v228_v30 = vpop.xlane.xlu1 %227 }
  0xe3   : > { %v423_v34 = vrot.slane %v226_v29, %v298_v59  ;;  %v428_v35 = vrot.slane %v228_v30, %v305_v13  ;;  %v308_v36 = vsel %vm307_vm7, %v306_v27, %v301_v32 }
  0xe4   : > { %784 = vmatmul.mubr.msk.f32.vlgmr.msra.gmra.mrb[0].mxu0 %vm309_vm8, %v308_v36 }
  0xe5   : > { %v424_v38 = vsel %vm300_vm6, %v423_v34, %v419_v37  ;;  %807 = vmatprep.mubr.msk.f32.mxu0 %vm993_vm0, %v994_v21  ;;  %806 = vmatpush3.msk.msra.mxu0 %vm508_vm9, %v245_v40 }
  0xe6   : > { %v429_v39 = vsel %vm307_vm7, %v428_v35, %v424_v38 }
  0xe7   : > { %803 = vmatmul.mubr.msk.f32.vlgmr.msra.gmra.mrb[0].mxu1 %vm309_vm8, %v429_v39 }
 0x1b7   : > { %v378_v41 = vpop.f32.mrb[0].mxu0 }
 0x1b8   : > { %v785_v42 = vpop.f32.mrb[1].mxu0  ;;  %v382_v44 = vmax.f32 %v378_v41, 0.0 }
 0x1ba   : > { %v498_v43 = vpop.f32.mrb[0].mxu1 }
 0x1bb   : > { %v502_v45 = vmax.f32 %v498_v43, 0.0  ;;  %v804_v46 = vpop.f32.mrb[1].mxu1 }
 0x1bd   : > { %v503_v47 = vadd.f32 %v502_v45, %v382_v44 }
 0x1bf   : > { %808 = vmatmul.mubr.msk.f32.vlgmr.msra.gmra.mrb[2].mxu0 %vm504_vm10, %v503_v47 }
 0x292   : > { %v578_v48 = vpop.f32.mrb[2].mxu0 }
 0x293   : > { %v739_v21 = vmul.f32 -1.442695, %v578_v48  ;;  %v809_v49 = vpop.f32.mrb[3].mxu0 }
 0x295   : > { %887 = vpow2.f32 %v739_v21 }
 0x29f   : > { %v888_v50 = vpop.eup %887 }
 0x2a0   : > { %v585_v51 = vadd.f32 1.0, %v888_v50 }
 0x2a2   : > { %889 = vrcp.f32 %v585_v51 }
 0x2ac   : > { %v890_v53 = vpop.eup %889 }
 0x2ad   : > { %v591_v54 = vrot.slane %v890_v53, %v590_v52 }
 0x2af   : > { %597 = vbcast.lane.b32.xlu1 %v591_v54, 264  ;;  %593 = vbcast.lane.b32.xlu0 %v591_v54, 256 }
 0x2b3   : > { %601 = vbcast.lane.b32.xlu1 %v591_v54, 272  ;;  %609 = vbcast.lane.b32.xlu0 %v591_v54, 288 }
 0x2b7   : > { %605 = vbcast.lane.b32.xlu1 %v591_v54, 280  ;;  %617 = vbcast.lane.b32.xlu0 %v591_v54, 304 }
 0x2bb   : > { %613 = vbcast.lane.b32.xlu1 %v591_v54, 296 }
 0x2bf   : > { %621 = vbcast.lane.b32.xlu1 %v591_v54, 312 }
 0x321   : > { %v598_v55 = vpop.permute.xlu1 %597  ;;  %v594_v56 = vpop.permute.xlu0 %593 }
 0x322   : > { %v624_v57 = vmul.f32 %v598_v55, %v1140_v3  ;;  %v623_v58 = vmul.f32 %v594_v56, %v1134_v1 }
 0x324   : > { %632 = vst [vmem:[%s188_s6 + $0x8] sm:$0xff] %v624_v57  ;;  %631 = vst [vmem:[%s188_s6] sm:$0xff] %v623_v58 }
 0x325   : > { %v602_v31 = vpop.permute.xlu1 %601  ;;  %v610_v59 = vpop.permute.xlu0 %609 }
 0x326   : > { %v625_v60 = vmul.f32 %v602_v31, %v1132_v0  ;;  %v627_v61 = vmul.f32 %v610_v59, %v1146_v4 }
 0x328   : > { %633 = vst [vmem:[%s188_s6 + $0x10] sm:$0xff] %v625_v60  ;;  %635 = vst [vmem:[%s188_s6 + $0x20] sm:$0xff] %v627_v61 }
 0x329   : > { %v606_v62 = vpop.permute.xlu1 %605  ;;  %v618_v63 = vpop.permute.xlu0 %617 }
 0x32a   : > { %v626_v3 = vmul.f32 %v606_v62, %v1138_v2  ;;  %v629_v1 = vmul.f32 %v618_v63, %v1154_v6 }
 0x32c   : > { %634 = vst [vmem:[%s188_s6 + $0x18] sm:$0xff] %v626_v3  ;;  %637 = vst [vmem:[%s188_s6 + $0x30] sm:$0xff] %v629_v1 }
 0x32d   : > { %v614_v8 = vpop.permute.xlu1 %613 }
 0x32e   : > { %v628_v9 = vmul.f32 %v614_v8, %v1150_v5 }
 0x330   : > { %636 = vst [vmem:[%s188_s6 + $0x28] sm:$0xff] %v628_v9 }
 0x331   : > { %v622_v0 = vpop.permute.xlu1 %621 }
 0x332   : > { %v630_v2 = vmul.f32 %v622_v0, %v1158_v7 }
 0x334   : > { %638 = vst [vmem:[%s188_s6 + $0x38] sm:$0xff] %v630_v2 }
 0x335   : > { %934 = shalt.err (!%p931_p2)
}
 0x336   : > { %s935_s28 = scalar_lea.hbm %s1238_s19, 1024  ;;  %s939_s10 = scalar_lea.hbm %s1286_s3, 2048 }
 0x337   : > { %p936_p4 = scmp.ne.s32.totalorder %s1238_s19, %s935_s28  ;;  %p940_p9 = scmp.lt.u32.totalorder %s1238_s19, %s1286_s3 }
 0x338   : > { %p941_p1 = scmp.lt.u32.totalorder %s939_s10, %s935_s28  ;;  %p943_p6 = scmp.lt.u32.totalorder %s935_s28, %s1238_s19 }
 0x339   : > { %p937_p5 = pnand %p936_p4, %p1293_p11 }
 0x33a   : > { %p942_p3 = por %p941_p1, %p940_p9 }
 0x33b   : > { %p938_p7 = pneg %p937_p5 }
 0x33c   : > { %p944_p12 = por %p943_p6, %p942_p3 }
 0x33e   : > { %p945_p13 = pnand %p944_p12, %p938_p7 }
 0x340   : > { %948 = shalt.err (!%p945_p13)
}
 0x341   : > { %s996_s4 = smov 128   ;;  %s997_s6 = smov 8  }
 0x342   : > { %836 = dma.vmem_to_hbm [thread:$0]  (%p1293_p11), %s1233_s9, 1024, %s1238_s19, %s640_s20, %s996_s4, %s996_s4, %s997_s6  }
 0x343 PF: > { %s668_s7 = sand.u32 1, %s975_s12   ;;  %p1294_p8 = scmp.ne.s32.totalorder %s1291_s25, 0 }
 0x344   : > { %p1295_p10 = scmp.ge.s32.totalorder %s987_s15, 2  ;;  %s669_s8 = scalar_lea.sflag [#allocation4], %s668_s7 }
 0x346   : > { %p843_p0 = pnand %p1295_p10, %p1294_p8 }
 0x348   : > { %970 = dma.done.wait (!%p843_p0), %s669_s8, 1024  }
 0x349   : > { %972 = vsyncadd (!%p843_p0), %s669_s8, 4294966272  ;;  %p16_p2 = scmp.ge.s32.totalorder %s1043_s18, 4   ;;  %s1296_s12 = smov %s979_s13 }
 0x34a   : > { %s1297_s13 = smov %s983_s14  ;;  %s1298_s14 = smov %s1055_s21 }
 0x34b   : > { %s1299_s15 = smov %s1043_s18  ;;  %18 = sbr.rel (!%p16_p2) target bundleno = 5 (0x5), region = 77 }
 0x352   :  { %674 = vsyncpa [#allocation3], 1 }
 0x353   :  { %676 = vsyncpa [#allocation3 + $0x1], 1 }
 0x354   :  { %677 = vsyncpa [#allocation4], 1 }
 0x355   :  { %679 = vsyncpa [#allocation4 + $0x1], 1 }

</bundles_post_ra>
